<compile_context>
chip_gen: v6e
topology: v6e:2x2x1
jax: 0.10.0
libtpu: 0.0.40
codegen_flags: <defaults>
</compile_context>

<pallas_src>
import functools

import jax
import jax.numpy as jnp
from jax import lax
from jax.experimental import pallas as pl
from jax.experimental.pallas import tpu as pltpu

LANE = 128
SUBLANE = 8


def _round_up(n, m):
    return ((n + m - 1) // m) * m


def _default_block_m():
    """128 rows per block on v5e (4x128^2 MXU); 256 on v6e/v7x (2x256^2 MXU)."""
    try:
        kind = jax.devices()[0].device_kind.lower()
    except Exception:
        return 128
    if "v6" in kind or "v7" in kind:
        return 256
    return 128


def policy_kernel(x_ref, w1_ref, b1_ref, wh_ref, bh_ref, out_ref, *, dim_action):
    # x:  (bm, dim_obs)      bf16
    # w1: (dim_obs, fc1_p)   bf16   b1: (1, fc1_p)  f32
    # wh: (fc1_p, head_p)    bf16   bh: (1, head_p) f32
    # out:(bm, head_p)       f32 = [action probs | state value | zero padding]
    x = x_ref[...]

    # affine1 + ReLU (bf16 MXU inputs, f32 accumulation)
    h = jnp.dot(x, w1_ref[...], preferred_element_type=jnp.float32) + b1_ref[...]
    h = jnp.maximum(h, 0.0)

    # fused action + value head: one MXU matmul, lane-dense output
    logits = jnp.dot(h.astype(wh_ref.dtype), wh_ref[...],
                     preferred_element_type=jnp.float32) + bh_ref[...]

    # numerically stable softmax over the action columns only
    col = lax.broadcasted_iota(jnp.int32, logits.shape, 1)
    is_action = col < dim_action
    masked = jnp.where(is_action, logits, -jnp.inf)
    m = jnp.max(masked, axis=-1, keepdims=True)
    e = jnp.exp(masked - m)                       # padded cols -> exp(-inf) = 0
    inv = pl.reciprocal(jnp.sum(e, axis=-1, keepdims=True), approx=True)
    probs = e * inv

    # column `dim_action` carries the raw (un-softmaxed) state value; columns
    # beyond that stay zero (probs of padded cols are 0).
    out_ref[...] = jnp.where(col == dim_action, logits, probs)


def make_policy_forward(params, block_m=None):
    """Preprocess parameters once and return a jitted forward(x) callable.

    forward accepts x of shape (dim_obs,) or (B, dim_obs) and returns
    (action_prob, state_value) with shapes matching the PyTorch module
    applied per observation.
    """
    w1, b1, wa, ba, wv, bv = params
    fc1, dim_obs = w1.shape
    dim_action = wa.shape[0]

    fc1_p = _round_up(fc1, LANE)
    head_p = _round_up(dim_action + 1, LANE)
    default_bm = block_m if block_m is not None else _default_block_m()

    # ---- one-time parameter preprocessing: transpose, pad, fuse, bf16-cast ----
    w1_t = jnp.zeros((dim_obs, fc1_p), jnp.float32).at[:, :fc1].set(w1.T)
    b1_p = jnp.zeros((1, fc1_p), jnp.float32).at[0, :fc1].set(b1)

    wh = jnp.zeros((fc1_p, head_p), jnp.float32)
    wh = wh.at[:fc1, :dim_action].set(wa.T)          # action head columns
    wh = wh.at[:fc1, dim_action].set(wv[0])          # value head column
    bh = jnp.zeros((1, head_p), jnp.float32)
    bh = bh.at[0, :dim_action].set(ba)
    bh = bh.at[0, dim_action].set(bv[0])

    w1_t = w1_t.astype(jnp.bfloat16)
    wh = wh.astype(jnp.bfloat16)

    kernel = functools.partial(policy_kernel, dim_action=dim_action)

    @jax.jit
    def forward(x):
        single = x.ndim == 1
        xb = x[None, :] if single else x
        B = xb.shape[0]

        # Adaptive block size: no wasted rows for small batches, MXU-sized
        # blocks for large batches.  All sizes static at trace time.
        b8 = _round_up(B, SUBLANE)
        if b8 <= default_bm:
            bm, b_pad = b8, b8
        else:
            bm, b_pad = default_bm, _round_up(B, default_bm)

        xb = xb.astype(jnp.bfloat16)
        if B == b_pad:
            x_p = xb
        else:
            x_p = jnp.zeros((b_pad, dim_obs), jnp.bfloat16).at[:B].set(xb)

        out = pl.pallas_call(
            kernel,
            out_shape=jax.ShapeDtypeStruct((b_pad, head_p), jnp.float32),
            grid_spec=pltpu.PrefetchScalarGridSpec(
                num_scalar_prefetch=0,
                grid=(b_pad // bm,),
                in_specs=[
                    pl.BlockSpec((bm, dim_obs), lambda i: (i, 0)),
                    pl.BlockSpec((dim_obs, fc1_p), lambda i: (0, 0)),
                    pl.BlockSpec((1, fc1_p), lambda i: (0, 0)),
                    pl.BlockSpec((fc1_p, head_p), lambda i: (0, 0)),
                    pl.BlockSpec((1, head_p), lambda i: (0, 0)),
                ],
                out_specs=pl.BlockSpec((bm, head_p), lambda i: (i, 0)),
            ),
            compiler_params=pltpu.CompilerParams(
                dimension_semantics=("parallel",)),
        )(x_p, w1_t, b1_p, wh, bh)

        probs = out[:B, :dim_action]
        value = out[:B, dim_action:dim_action + 1]
        if single:
            return probs[0], value[0]
        return probs, value

    return forward


def init_params(key, dim_obs, dim_action, fc1):
    """Deterministic synthetic init mimicking nn.Linear (uniform +-1/sqrt(fan_in))."""
    ks = jax.random.split(key, 6)

    def lin(kw, kb, fan_in, fan_out):
        bound = 1.0 / jnp.sqrt(fan_in)
        w = jax.random.uniform(kw, (fan_out, fan_in), jnp.float32, -bound, bound)
        b = jax.random.uniform(kb, (fan_out,), jnp.float32, -bound, bound)
        return w, b

    w1, b1 = lin(ks[0], ks[1], dim_obs, fc1)
    wa, ba = lin(ks[2], ks[3], fc1, dim_action)
    wv, bv = lin(ks[4], ks[5], fc1, 1)
    return (w1, b1, wa, ba, wv, bv)
    # TODO(synk): optimizer / saved_actions / rewards bookkeeping of the PyTorch
    # module is training state, not part of the forward pass, and is not ported.


if __name__ == "__main__":
    dim_obs, dim_action, fc1 = 16, 8, 32
    B = 64

    key = jax.random.PRNGKey(0)
    k_param, k_x = jax.random.split(key)
    params = init_params(k_param, dim_obs, dim_action, fc1)
    x = jax.random.normal(k_x, (B, dim_obs), jnp.float32)

    policy = make_policy_forward(params)

    # Batched forward
    probs, values = policy(x)
    jax.block_until_ready((probs, values))

    # Pure-JAX f32 reference of the same math (per-observation softmax)
    w1, b1, wa, ba, wv, bv = params
    h_ref = jnp.maximum(x @ w1.T + b1, 0.0)
    probs_ref = jax.nn.softmax(h_ref @ wa.T + ba, axis=-1)
    vals_ref = h_ref @ wv.T + bv

    assert probs.shape == (B, dim_action)
    assert values.shape == (B, 1)
    # bf16 MXU inputs + approx reciprocal -> relaxed tolerance vs f32 reference
    assert jnp.allclose(probs, probs_ref, atol=2e-2)
    assert jnp.allclose(values, vals_ref, atol=2e-2)
    assert jnp.allclose(jnp.sum(probs, axis=-1), 1.0, atol=5e-3)

    # Single-observation path (matches the PyTorch module's 1-D forward, dim=0)
    p1, v1 = policy(x[0])
    jax.block_until_ready((p1, v1))
    assert p1.shape == (dim_action,) and v1.shape == (1,)
    assert jnp.allclose(p1, probs_ref[0], atol=2e-2)
    assert jnp.allclose(v1, vals_ref[0], atol=2e-2)

    # Larger-than-one-block batch exercises the grid / padding path
    B2 = 300
    x2 = jax.random.normal(jax.random.PRNGKey(1), (B2, dim_obs), jnp.float32)
    p2, v2 = policy(x2)
    jax.block_until_ready((p2, v2))
    h2 = jnp.maximum(x2 @ w1.T + b1, 0.0)
    assert jnp.allclose(p2, jax.nn.softmax(h2 @ wa.T + ba, axis=-1), atol=2e-2)
    assert jnp.allclose(v2, h2 @ wv.T + bv, atol=2e-2)

    print("KERNEL_OK")
</pallas_src>

<mosaic_0001>
module attributes {stable_mosaic.version = 11 : i64} {
  func.func @policy_kernel(%arg0: i32, %arg1: memref<64x16xbf16, #tpu.memory_space<vmem>>, %arg2: memref<16x128xbf16, #tpu.memory_space<vmem>>, %arg3: memref<1x128xf32, #tpu.memory_space<vmem>>, %arg4: memref<128x128xbf16, #tpu.memory_space<vmem>>, %arg5: memref<1x128xf32, #tpu.memory_space<vmem>>, %arg6: memref<64x128xf32, #tpu.memory_space<vmem>>) attributes {dimension_semantics = [#tpu.dimension_semantics<parallel>], iteration_bounds = array<i64: 1>, scalar_prefetch = 0 : i64, scratch_operands = 0 : i64, tpu.core_type = #tpu.core_type<tc>, window_params = [{transform_indices = @transform_0, window_bounds = array<i64: 64, 16>}, {pipeline_mode = #tpu.pipeline_mode<synchronous>, transform_indices = @transform_1, window_bounds = array<i64: 16, 128>}, {pipeline_mode = #tpu.pipeline_mode<synchronous>, transform_indices = @transform_2, window_bounds = array<i64: 1, 128>}, {pipeline_mode = #tpu.pipeline_mode<synchronous>, transform_indices = @transform_3, window_bounds = array<i64: 128, 128>}, {pipeline_mode = #tpu.pipeline_mode<synchronous>, transform_indices = @transform_4, window_bounds = array<i64: 1, 128>}, {transform_indices = @transform_5, window_bounds = array<i64: 64, 128>}]} {
    %c0 = arith.constant 0 : index
    %c0_0 = arith.constant 0 : index
    %0 = vector.load %arg1[%c0, %c0_0] : memref<64x16xbf16, #tpu.memory_space<vmem>>, vector<64x16xbf16>
    %c0_1 = arith.constant 0 : index
    %c0_2 = arith.constant 0 : index
    %1 = vector.load %arg2[%c0_1, %c0_2] : memref<16x128xbf16, #tpu.memory_space<vmem>>, vector<16x128xbf16>
    %cst = arith.constant dense<0.000000e+00> : vector<64x128xf32>
    %2 = tpu.matmul %0, %1, %cst {dimension_numbers = #tpu.dot_dimension_numbers<[1], [0], [0], [1], [0, 0, 1, 1], [], []>} : vector<64x16xbf16>, vector<16x128xbf16>, vector<64x128xf32> -> vector<64x128xf32>
    %c0_3 = arith.constant 0 : index
    %c0_4 = arith.constant 0 : index
    %3 = vector.load %arg3[%c0_3, %c0_4] : memref<1x128xf32, #tpu.memory_space<vmem>>, vector<1x128xf32>
    %4 = vector.broadcast %3 : vector<1x128xf32> to vector<64x128xf32>
    %5 = arith.addf %2, %4 : vector<64x128xf32>
    %cst_5 = arith.constant 0.000000e+00 : f32
    %6 = vector.broadcast %cst_5 : f32 to vector<64x128xf32>
    %7 = arith.maximumf %5, %6 : vector<64x128xf32>
    %8 = arith.truncf %7 : vector<64x128xf32> to vector<64x128xbf16>
    %c0_6 = arith.constant 0 : index
    %c0_7 = arith.constant 0 : index
    %9 = vector.load %arg4[%c0_6, %c0_7] : memref<128x128xbf16, #tpu.memory_space<vmem>>, vector<128x128xbf16>
    %cst_8 = arith.constant dense<0.000000e+00> : vector<64x128xf32>
    %10 = tpu.matmul %8, %9, %cst_8 {dimension_numbers = #tpu.dot_dimension_numbers<[1], [0], [0], [1], [0, 0, 1, 1], [], []>} : vector<64x128xbf16>, vector<128x128xbf16>, vector<64x128xf32> -> vector<64x128xf32>
    %c0_9 = arith.constant 0 : index
    %c0_10 = arith.constant 0 : index
    %11 = vector.load %arg5[%c0_9, %c0_10] : memref<1x128xf32, #tpu.memory_space<vmem>>, vector<1x128xf32>
    %12 = vector.broadcast %11 : vector<1x128xf32> to vector<64x128xf32>
    %13 = arith.addf %10, %12 : vector<64x128xf32>
    %14 = tpu.iota {dimensions = array<i32: 1>} : vector<64x128xi32>
    %c8_i32 = arith.constant 8 : i32
    %15 = vector.broadcast %c8_i32 : i32 to vector<64x128xi32>
    %16 = arith.cmpi slt, %14, %15 : vector<64x128xi32>
    %cst_11 = arith.constant 0xFF800000 : f32
    %17 = vector.broadcast %cst_11 : f32 to vector<64x128xf32>
    %18 = arith.select %16, %13, %17 : vector<64x128xi1>, vector<64x128xf32>
    %cst_12 = arith.constant dense<0xFF800000> : vector<64xf32>
    %19 = vector.multi_reduction <maximumf>, %18, %cst_12 [1] : vector<64x128xf32> to vector<64xf32>
    %20 = vector.shape_cast %19 : vector<64xf32> to vector<64x1xf32>
    %21 = vector.broadcast %20 : vector<64x1xf32> to vector<64x128xf32>
    %22 = arith.subf %18, %21 : vector<64x128xf32>
    %23 = math.exp %22 : vector<64x128xf32>
    %cst_13 = arith.constant dense<0.000000e+00> : vector<64xf32>
    %24 = vector.multi_reduction <add>, %23, %cst_13 [1] : vector<64x128xf32> to vector<64xf32>
    %25 = vector.shape_cast %24 : vector<64xf32> to vector<64x1xf32>
    %26 = tpu.reciprocal %25 {approx = true} : vector<64x1xf32> -> vector<64x1xf32>
    %27 = vector.broadcast %26 : vector<64x1xf32> to vector<64x128xf32>
    %28 = arith.mulf %23, %27 : vector<64x128xf32>
    %c8_i32_14 = arith.constant 8 : i32
    %29 = vector.broadcast %c8_i32_14 : i32 to vector<64x128xi32>
    %30 = arith.cmpi eq, %14, %29 : vector<64x128xi32>
    %31 = arith.select %30, %13, %28 : vector<64x128xi1>, vector<64x128xf32>
    %c0_15 = arith.constant 0 : index
    %c0_16 = arith.constant 0 : index
    %32 = vector.load %arg6[%c0_15, %c0_16] : memref<64x128xf32, #tpu.memory_space<vmem>>, vector<64x128xf32>
    tpu.vector_store %arg6[%c0_15, %c0_16], %31 {strides = array<i32>} : memref<64x128xf32, #tpu.memory_space<vmem>>, vector<64x128xf32>,
    return
  }
  func.func @transform_0(%arg0: i32) -> (i32, i32) {
    %c0_i32 = arith.constant 0 : i32
    %c0_i32_0 = arith.constant 0 : i32
    return %arg0, %c0_i32 : i32, i32
  }
  func.func @transform_1(%arg0: i32) -> (i32, i32) {
    %c0_i32 = arith.constant 0 : i32
    %c0_i32_0 = arith.constant 0 : i32
    %c0_i32_1 = arith.constant 0 : i32
    return %c0_i32, %c0_i32_0 : i32, i32
  }
  func.func @transform_2(%arg0: i32) -> (i32, i32) {
    %c0_i32 = arith.constant 0 : i32
    %c0_i32_0 = arith.constant 0 : i32
    %c0_i32_1 = arith.constant 0 : i32
    return %c0_i32, %c0_i32_0 : i32, i32
  }
  func.func @transform_3(%arg0: i32) -> (i32, i32) {
    %c0_i32 = arith.constant 0 : i32
    %c0_i32_0 = arith.constant 0 : i32
    %c0_i32_1 = arith.constant 0 : i32
    return %c0_i32, %c0_i32_0 : i32, i32
  }
  func.func @transform_4(%arg0: i32) -> (i32, i32) {
    %c0_i32 = arith.constant 0 : i32
    %c0_i32_0 = arith.constant 0 : i32
    %c0_i32_1 = arith.constant 0 : i32
    return %c0_i32, %c0_i32_0 : i32, i32
  }
  func.func @transform_5(%arg0: i32) -> (i32, i32) {
    %c0_i32 = arith.constant 0 : i32
    %c0_i32_0 = arith.constant 0 : i32
    return %arg0, %c0_i32 : i32, i32
  }
}

</mosaic_0001>

<bundles_post_ra>
// kernel: forward.1
= control target key start
LH: loop header
LB: loop body
LE: loop exit
PB: predicated region body
PF: predicated region fallthrough
CT: control target
= control target key end

     0   :  { %10 = vsyncpa [#allocation3], 0  ;;  %s565_s18 = smov [#allocation2]   ;;  %s739_s0 = inlined_call_operand.vmem [shape: bf16[64,16], index: 0, kind: input, shape index: {}]   ;;  %s740_s1 = inlined_call_operand.hbm [shape: bf16[16,128], index: 1, kind: input, shape index: {}]   ;;  %s741_s2 = inlined_call_operand.vmem [shape: f32[1,128], index: 2, kind: input, shape index: {}]   ;;  %s742_s3 = inlined_call_operand.vmem [shape: bf16[128,128], index: 3, kind: input, shape index: {}]   ;;  %s743_s4 = inlined_call_operand.vmem [shape: f32[1,128], index: 4, kind: input, shape index: {}]   ;;  %s744_s5 = inlined_call_operand.vmem [shape: f32[64,128], index: 5, kind: output, shape index: {}]  }
   0x1   :  { %s18_s19 = sshll.u32 %s565_s18, 4  ;;  %s19_s19 = int_to_ptr.vmem [resolvable:$true] %s18_s19 }
   0x2   :  { %s551_s20 = scalar_lea.vmem %s19_s19, 128  ;;  %p556_p1 = scmp.lt.s32.totalorder %s19_s19, %s19_s19 }
   0x3   :  { %p552_p0 = scmp.ne.s32.totalorder %s19_s19, %s551_s20  ;;  %p557_p2 = scmp.lt.s32.totalorder %s551_s20, %s551_s20 }
   0x5   :  { %p558_p3 = por %p557_p2, %p556_p1 }
   0x7   :  { %p559_p4 = pnand %p558_p3, %p552_p0 }
   0x9   :  { %562 = shalt.err (!%p559_p4)
}
   0xa   :  { %s566_s21 = smov 64   ;;  %s567_s22 = smov 4  }
   0xb   :  { %24 = dma.hbm_to_vmem [thread:$0]  %s740_s1, 128, %s19_s19, [#allocation3], %s566_s21, %s566_s21, %s567_s22  }
   0xc   :  { %563 = dma.done.wait [#allocation3], 128  }
   0xd   :  { %564 = vsyncadd [#allocation3], 4294967168  ;;  %v498_v0 = vld [vmem:[#allocation2] sm:$0xff]   ;;  %vm78_vm0 = vcmask 130048   ;;  %v500_v2 = vld [vmem:[%s739_s0 + $0x8] sm:$0xff]   ;;  %v304_v42 = vlaneseq }
   0xe   :  { %v499_v1 = vld [vmem:[%s739_s0] sm:$0xff]   ;;  %445 = vmatprep.subr.bf16.mxu0 %v498_v0  ;;  %v501_v3 = vld [vmem:[%s739_s0 + $0x10] sm:$0xff]   ;;  %v503_v4 = vld [vmem:[%s742_s3 + $0x38] sm:$0xff]  }
   0xf   :  { %446 = vmatpush3.bf16.msra.mxu0 %v498_v0  ;;  %447 = vmatprep.mubr.msk.bf16.mxu0 %vm78_vm0, %v499_v1  ;;  %v504_v5 = vld [vmem:[%s742_s3 + $0x30] sm:$0xff]   ;;  %v502_v6 = vld [vmem:[%s739_s0 + $0x18] sm:$0xff]   ;;  %v505_v7 = vld [vmem:[%s742_s3 + $0x28] sm:$0xff]   ;;  %v644_v43 = vand.u32 127, %v304_v42 }
  0x10   :  { %455 = vmatprep.subr.bf16.mxu0 %v503_v4  ;;  %479 = vmatprep.subr.bf16.mxu1 %v503_v4  ;;  %v506_v8 = vld [vmem:[%s742_s3 + $0x20] sm:$0xff]   ;;  %v507_v9 = vld [vmem:[%s742_s3 + $0x18] sm:$0xff]   ;;  %v508_v10 = vld [vmem:[%s742_s3 + $0x10] sm:$0xff]  }
  0x11   :  { %487 = vmatpush3.bf16.msra.mxu1 %v503_v4  ;;  %v509_v11 = vld [vmem:[%s742_s3 + $0x8] sm:$0xff]   ;;  %v510_v12 = vld [vmem:[%s742_s3] sm:$0xff]   ;;  %vm306_vm1 = vcmp.lt.s32.totalorder %v644_v43, 8  ;;  %vm387_vm2 = vcmp.eq.s32.totalorder %v644_v43, 8 }
  0x12   :  { %448 = vmatmul.mubr.msk.bf16.vlgmr.msra.gmra.mxu0 %vm78_vm0, %v500_v2  ;;  %480 = vmatprep.subr.bf16.mxu1 %v504_v5  ;;  %v409_v15 = vld [vmem:[%s741_s2] ss:$0 sm:$0xff] }
  0x13   :  { %451 = vmatprep.mubr.msk.bf16.mxu0 %vm78_vm0, %v501_v3  ;;  %456 = vmatpush3.bf16.msra.mxu0 %v503_v4  ;;  %v419_v44 = vld [vmem:[%s743_s4] ss:$0 sm:$0xff] }
  0x14   :  { %457 = vmatprep.subr.bf16.mxu0 %v504_v5 }
  0x15   :  { %488 = vmatpush3.bf16.msra.mxu1 %v504_v5 }
  0x16   :  { %481 = vmatprep.subr.bf16.mxu1 %v505_v7 }
  0x17   :  { %458 = vmatpush3.bf16.msra.mxu0 %v504_v5 }
  0x18   :  { %459 = vmatprep.subr.bf16.mxu0 %v505_v7 }
  0x19   :  { %489 = vmatpush3.bf16.msra.mxu1 %v505_v7 }
  0x1a   :  { %452 = vmatmul.mubr.msk.bf16.gmra.mxu0 %vm78_vm0, %v502_v6  ;;  %482 = vmatprep.subr.bf16.mxu1 %v506_v8 }
  0x1b   :  { %460 = vmatpush3.bf16.msra.mxu0 %v505_v7 }
  0x1c   :  { %461 = vmatprep.subr.bf16.mxu0 %v506_v8 }
  0x1d   :  { %490 = vmatpush3.bf16.msra.mxu1 %v506_v8 }
  0x1e   :  { %483 = vmatprep.subr.bf16.mxu1 %v507_v9 }
  0x1f   :  { %462 = vmatpush3.bf16.msra.mxu0 %v506_v8 }
  0x20   :  { %463 = vmatprep.subr.bf16.mxu0 %v507_v9 }
  0x21   :  { %491 = vmatpush3.bf16.msra.mxu1 %v507_v9 }
  0x22   :  { %484 = vmatprep.subr.bf16.mxu1 %v508_v10 }
  0x23   :  { %464 = vmatpush3.bf16.msra.mxu0 %v507_v9 }
  0x24   :  { %465 = vmatprep.subr.bf16.mxu0 %v508_v10 }
  0x25   :  { %492 = vmatpush3.bf16.msra.mxu1 %v508_v10 }
  0x26   :  { %485 = vmatprep.subr.bf16.mxu1 %v509_v11 }
  0x27   :  { %466 = vmatpush3.bf16.msra.mxu0 %v508_v10 }
  0x28   :  { %467 = vmatprep.subr.bf16.mxu0 %v509_v11 }
  0x29   :  { %493 = vmatpush3.bf16.msra.mxu1 %v509_v11 }
  0x2a   :  { %486 = vmatprep.subr.bf16.mxu1 %v510_v12 }
  0x2b   :  { %468 = vmatpush3.bf16.msra.mxu0 %v509_v11 }
  0x2c   :  { %469 = vmatprep.subr.bf16.mxu0 %v510_v12 }
  0x2d   :  { %494 = vmatpush3.bf16.msra.mxu1 %v510_v12 }
  0x2f   :  { %470 = vmatpush3.bf16.msra.mxu0 %v510_v12 }
  0xd2   :  { %v449_v13 = vpop.f32.mrf.mxu0 }
  0xd3   :  { %v134_v19 = vadd.f32 %v449_v13, %v409_v15 }
  0xd4   :  { %v125_v14 = vpop.f32.mrf.mxu0 }
  0xd5   :  { %v126_v17 = vadd.f32 %v409_v15, %v125_v14  ;;  %v158_v26 = vmax.f32 %v134_v19, 0.0 }
  0xd6   :  { %v450_v16 = vpop.f32.mrf.mxu0 }
  0xd7   :  { %v137_v18 = vadd.f32 %v450_v16, %v409_v15  ;;  %v156_v24 = vmax.f32 %v126_v17, 0.0 }
  0xd8   :  { %v128_v20 = vpop.f32.mrf.mxu0 }
  0xd9   :  { %v129_v21 = vadd.f32 %v409_v15, %v128_v20  ;;  %v159_v22 = vmax.f32 %v137_v18, 0.0 }
  0xda   :  { %v453_v23 = vpop.f32.mrf.mxu0 }
  0xdb   :  { %v157_v25 = vmax.f32 %v129_v21, 0.0  ;;  %v165_v29 = vpack.c.bf16 %v159_v22, %v158_v26  ;;  %v150_v33 = vadd.f32 %v453_v23, %v409_v15 }
  0xdc   :  { %v141_v27 = vpop.f32.mrf.mxu0 }
  0xdd   :  { %v164_v28 = vpack.c.bf16 %v157_v25, %v156_v24  ;;  %v142_v31 = vadd.f32 %v409_v15, %v141_v27  ;;  %v162_v39 = vmax.f32 %v150_v33, 0.0 }
  0xde   :  { %v454_v30 = vpop.f32.mrf.mxu0 }
  0xdf   :  { %v153_v32 = vadd.f32 %v454_v30, %v409_v15  ;;  %471 = vmatprep.mubr.bf16.mxu0 %v164_v28  ;;  %v160_v37 = vmax.f32 %v142_v31, 0.0 }
  0xe0   :  { %v144_v34 = vpop.f32.mrf.mxu0  ;;  %472 = vmatmul.mubr.bf16.vlgmr.msra.gmra.mxu0 %v165_v29 }
  0xe1   :  { %v145_v35 = vadd.f32 %v409_v15, %v144_v34  ;;  %v163_v36 = vmax.f32 %v153_v32, 0.0 }
  0xe3   :  { %v161_v38 = vmax.f32 %v145_v35, 0.0  ;;  %v167_v41 = vpack.c.bf16 %v163_v36, %v162_v39 }
  0xe5   :  { %v166_v40 = vpack.c.bf16 %v161_v38, %v160_v37 }
  0xe7   :  { %475 = vmatprep.mubr.bf16.mxu1 %v166_v40 }
  0xe8   :  { %476 = vmatmul.mubr.bf16.vlgmr.msra.gmra.mxu1 %v167_v41 }
 0x1a0   :  { %v473_v45 = vpop.f32.mrf.mxu0 }
 0x1a1   :  { %v650_v46 = vadd.f32 %v473_v45, %v419_v44 }
 0x1a2   :  { %v273_v47 = vpop.f32.mrf.mxu0 }
 0x1a3   :  { %v652_v48 = vadd.f32 %v419_v44, %v273_v47  ;;  %v309_v49 = vsel %vm306_vm1, %v650_v46, -inf }
 0x1a4   :  { %319 = vmax.xlane.f32.xlu1 %v309_v49  ;;  %v474_v50 = vpop.f32.mrf.mxu0 }
 0x1a5   :  { %v657_v51 = vadd.f32 %v474_v50, %v419_v44  ;;  %v307_v52 = vsel %vm306_vm1, %v652_v48, -inf }
 0x1a6   :  { %v276_v53 = vpop.f32.mrf.mxu0  ;;  %315 = vmax.xlane.f32.xlu0 %v307_v52 }
 0x1a7   :  { %v662_v54 = vadd.f32 %v419_v44, %v276_v53  ;;  %v310_v55 = vsel %vm306_vm1, %v657_v51, -inf }
 0x1a8   :  { %v477_v56 = vpop.f32.mrf.mxu1  ;;  %321 = vmax.xlane.f32.xlu1 %v310_v55 }
 0x1a9   :  { %v308_v57 = vsel %vm306_vm1, %v662_v54, -inf  ;;  %v672_v61 = vadd.f32 %v477_v56, %v419_v44 }
 0x1aa   :  { %v289_v58 = vpop.f32.mrf.mxu1  ;;  %317 = vmax.xlane.f32.xlu0 %v308_v57 }
 0x1ab   :  { %v670_v59 = vadd.f32 %v419_v44, %v289_v58  ;;  %v313_v3 = vsel %vm306_vm1, %v672_v61, -inf }
 0x1ac   :  { %v478_v60 = vpop.f32.mrf.mxu1 }
 0x1ad   :  { %v311_v62 = vsel %vm306_vm1, %v670_v59, -inf  ;;  %v679_v1 = vadd.f32 %v478_v60, %v419_v44 }
 0x1ae   :  { %v292_v63 = vpop.f32.mrf.mxu1  ;;  %323 = vmax.xlane.f32.xlu0 %v311_v62 }
 0x1af   :  { %v677_v0 = vadd.f32 %v419_v44, %v292_v63  ;;  %v314_v4 = vsel %vm306_vm1, %v679_v1, -inf }
 0x1b1   :  { %v312_v2 = vsel %vm306_vm1, %v677_v0, -inf }
 0x1b2   :  { %325 = vmax.xlane.f32.xlu1 %v312_v2  ;;  %327 = vmax.xlane.f32.xlu0 %v313_v3 }
 0x1b6   :  { %329 = vmax.xlane.f32.xlu1 %v314_v4 }
 0x22d   :  { %v320_v5 = vpop.xlane.xlu1 %319 }
 0x22e   :  { %v333_v6 = vsub.f32 %v309_v49, %v320_v5 }
 0x22f   :  { %v316_v7 = vpop.xlane.xlu0 %315 }
 0x230   :  { %v343_v8 = vmul.f32 1.442695, %v333_v6  ;;  %v331_v9 = vsub.f32 %v307_v52, %v316_v7 }
 0x231   :  { %v322_v10 = vpop.xlane.xlu1 %321 }
 0x232   :  { %511 = vpow2.f32 %v343_v8  ;;  %v339_v11 = vmul.f32 1.442695, %v331_v9  ;;  %v334_v12 = vsub.f32 %v310_v55, %v322_v10 }
 0x233   :  { %v318_v13 = vpop.xlane.xlu0 %317 }
 0x234   :  { %v345_v14 = vmul.f32 1.442695, %v334_v12  ;;  %v332_v15 = vsub.f32 %v308_v57, %v318_v13  ;;  %513 = vpow2.f32 %v339_v11 }
 0x236   :  { %515 = vpow2.f32 %v345_v14  ;;  %v341_v16 = vmul.f32 1.442695, %v332_v15 }
 0x237   :  { %v324_v17 = vpop.xlane.xlu0 %323 }
 0x238   :  { %v335_v18 = vsub.f32 %v311_v62, %v324_v17  ;;  %517 = vpow2.f32 %v341_v16 }
 0x23a   :  { %v347_v19 = vmul.f32 1.442695, %v335_v18 }
 0x23b   :  { %v326_v20 = vpop.xlane.xlu1 %325  ;;  %v328_v21 = vpop.xlane.xlu0 %327 }
 0x23c   :  { %519 = vpow2.f32 %v347_v19  ;;  %v336_v22 = vsub.f32 %v312_v2, %v326_v20  ;;  %v337_v23 = vsub.f32 %v313_v3, %v328_v21 }
 0x23e   :  { %v349_v24 = vmul.f32 1.442695, %v336_v22  ;;  %v351_v25 = vmul.f32 1.442695, %v337_v23 }
 0x23f   :  { %v512_v26 = vpop.eup %511  ;;  %v330_v27 = vpop.xlane.xlu1 %329 }
 0x240   :  { %521 = vpow2.f32 %v349_v24  ;;  %v338_v28 = vsub.f32 %v314_v4, %v330_v27  ;;  %359 = vadd.xlane.f32.xlu0 %v512_v26 }
 0x241   :  { %523 = vpow2.f32 %v351_v25  ;;  %v514_v29 = vpop.eup %513 }
 0x242   :  { %v353_v30 = vmul.f32 1.442695, %v338_v28 }
 0x243   :  { %v516_v31 = vpop.eup %515 }
 0x244   :  { %525 = vpow2.f32 %v353_v30  ;;  %361 = vadd.xlane.f32.xlu1 %v516_v31  ;;  %355 = vadd.xlane.f32.xlu0 %v514_v29 }
 0x245   :  { %v518_v32 = vpop.eup %517 }
 0x248   :  { %357 = vadd.xlane.f32.xlu1 %v518_v32 }
 0x249   :  { %v520_v33 = vpop.eup %519 }
 0x24a   :  { %363 = vadd.xlane.f32.xlu0 %v520_v33 }
 0x24d   :  { %v522_v34 = vpop.eup %521 }
 0x24e   :  { %v524_v35 = vpop.eup %523  ;;  %365 = vadd.xlane.f32.xlu1 %v522_v34 }
 0x24f   :  { %367 = vadd.xlane.f32.xlu0 %v524_v35 }
 0x251   :  { %v526_v36 = vpop.eup %525 }
 0x252   :  { %369 = vadd.xlane.f32.xlu1 %v526_v36 }
 0x2c9   :  { %v360_v37 = vpop.xlane.xlu0 %359 }
 0x2ca   :  { %527 = vrcp.f32 %v360_v37 }
 0x2cd   :  { %v362_v38 = vpop.xlane.xlu1 %361  ;;  %v356_v39 = vpop.xlane.xlu0 %355 }
 0x2ce   :  { %529 = vrcp.f32 %v362_v38 }
 0x2cf   :  { %531 = vrcp.f32 %v356_v39 }
 0x2d1   :  { %v358_v40 = vpop.xlane.xlu1 %357 }
 0x2d2   :  { %533 = vrcp.f32 %v358_v40 }
 0x2d3   :  { %v364_v41 = vpop.xlane.xlu0 %363 }
 0x2d4   :  { %535 = vrcp.f32 %v364_v41 }
 0x2d7   :  { %v528_v42 = vpop.eup %527  ;;  %v366_v44 = vpop.xlane.xlu1 %365 }
 0x2d8   :  { %v381_v45 = vmul.f32 %v528_v42, %v512_v26  ;;  %537 = vrcp.f32 %v366_v44  ;;  %v368_v47 = vpop.xlane.xlu0 %367 }
 0x2d9   :  { %539 = vrcp.f32 %v368_v47 }
 0x2da   :  { %v390_v49 = vsel %vm387_vm2, %v650_v46, %v381_v45 }
 0x2db   :  { %v530_v50 = vpop.eup %529  ;;  %398 = vst [vmem:[%s744_s5 + $0x10] sm:$0xff] %v390_v49  ;;  %v370_v52 = vpop.xlane.xlu1 %369 }
 0x2dc   :  { %v532_v53 = vpop.eup %531  ;;  %v382_v55 = vmul.f32 %v530_v50, %v516_v31  ;;  %541 = vrcp.f32 %v370_v52 }
 0x2dd   :  { %v379_v56 = vmul.f32 %v532_v53, %v514_v29 }
 0x2de   :  { %v391_v57 = vsel %vm387_vm2, %v657_v51, %v382_v55 }
 0x2df   :  { %v534_v58 = vpop.eup %533  ;;  %399 = vst [vmem:[%s744_s5 + $0x18] sm:$0xff] %v391_v57  ;;  %v388_v46 = vsel %vm387_vm2, %v652_v48, %v379_v56 }
 0x2e0   :  { %396 = vst [vmem:[%s744_s5] sm:$0xff] %v388_v46  ;;  %v380_v60 = vmul.f32 %v534_v58, %v518_v32 }
 0x2e1   :  { %v536_v62 = vpop.eup %535 }
 0x2e2   :  { %v389_v63 = vsel %vm387_vm2, %v662_v54, %v380_v60  ;;  %v383_v51 = vmul.f32 %v536_v62, %v520_v33 }
 0x2e3   :  { %397 = vst [vmem:[%s744_s5 + $0x8] sm:$0xff] %v389_v63 }
 0x2e4   :  { %v392_v2 = vsel %vm387_vm2, %v670_v59, %v383_v51 }
 0x2e5   :  { %v538_v48 = vpop.eup %537  ;;  %400 = vst [vmem:[%s744_s5 + $0x20] sm:$0xff] %v392_v2 }
 0x2e6   :  { %v540_v3 = vpop.eup %539  ;;  %v384_v4 = vmul.f32 %v538_v48, %v522_v34 }
 0x2e7   :  { %v385_v5 = vmul.f32 %v540_v3, %v524_v35 }
 0x2e8   :  { %v393_v54 = vsel %vm387_vm2, %v677_v0, %v384_v4 }
 0x2e9   :  { %v542_v6 = vpop.eup %541  ;;  %401 = vst [vmem:[%s744_s5 + $0x28] sm:$0xff] %v393_v54  ;;  %v394_v59 = vsel %vm387_vm2, %v672_v61, %v385_v5 }
 0x2ea   :  { %402 = vst [vmem:[%s744_s5 + $0x30] sm:$0xff] %v394_v59  ;;  %v386_v7 = vmul.f32 %v542_v6, %v526_v36 }
 0x2ec   :  { %v395_v8 = vsel %vm387_vm2, %v679_v1, %v386_v7 }
 0x2ed   :  { %403 = vst [vmem:[%s744_s5 + $0x38] sm:$0xff] %v395_v8 }
 0x2ee   :  { %408 = vsyncpa [#allocation3], 1 }

</bundles_post_ra>
